<compile_context>
chip_gen: v7x
topology: tpu7x:2x2x1
jax: 0.10.0
libtpu: 0.0.40
codegen_flags: <defaults>
</compile_context>

<pallas_src>
import jax
import jax.numpy as jnp
import numpy as np
from jax.experimental import pallas as pl
from jax.experimental.pallas import tpu as pltpu

_N_OUT_PAD = 128  # lane-dense logits slab (real d_output = 2)


def _pool_kernel(ids_ref, lens_ref, emb_ref, pooled_ref):
    """Fused S4Embedding (gather-as-matmul on MXU) + length-masked mean pooling.

    Backbone == identity, so  pooled[b] = sqrt(D)/len_b * sum_{t<len_b} emb[ids[b,t]].
    """
    TB, L = ids_ref.shape
    V, D = emb_ref.shape

    ids = ids_ref[...]                                       # (TB, L) int32
    lens = lens_ref[...]                                     # (TB, 1) int32

    # (TB, V, L): token t of row b hits vocab slot v AND t < len_b.
    # Out-of-range ids match no slot -> zero contribution (torch raises instead).
    v_iota = jax.lax.broadcasted_iota(jnp.int32, (TB, V, L), 1)
    t_iota = jax.lax.broadcasted_iota(jnp.int32, (TB, V, L), 2)
    match = jnp.logical_and(v_iota == ids[:, None, :], t_iota < lens[:, :, None])

    # Masked histogram over the vocab; counts are exact small ints (<= L), so a
    # bf16 cast is lossless for L <= 256 and the matmul accumulates in f32.
    counts = jnp.sum(match.astype(jnp.float32), axis=2)      # (TB, V)
    pooled = jnp.dot(counts.astype(jnp.bfloat16), emb_ref[...],
                     preferred_element_type=jnp.float32)     # (TB, D) f32 on MXU

    inv_len = 1.0 / jnp.maximum(lens, 1).astype(jnp.float32)  # zero-length guard
    pooled_ref[...] = pooled * inv_len * (D ** 0.5)           # rescale=True


def _decoder_kernel(pooled_ref, w1_ref, b1_ref, w2_ref, b2_ref, out_ref):
    """Decoder MLP: Linear(D, D) -> ReLU -> Linear(D, 2 padded to 128 lanes)."""
    h = jnp.dot(pooled_ref[...].astype(jnp.bfloat16), w1_ref[...],
                preferred_element_type=jnp.float32) + b1_ref[...]
    h = jnp.maximum(h, 0.0)
    out_ref[...] = jnp.dot(h.astype(jnp.bfloat16), w2_ref[...],
                           preferred_element_type=jnp.float32) + b2_ref[...]


def prepare_params(params):
    """One-time parameter packing: bf16 weights, lane-padded final linear.

    Kept outside the per-call path so every forward call carries no padding /
    casting work or extra HBM traffic.
    """
    D = params["w1"].shape[0]
    d_output = params["w2"].shape[1]
    w2p = jnp.zeros((D, _N_OUT_PAD), jnp.float32).at[:, :d_output].set(params["w2"])
    b2p = jnp.zeros((1, _N_OUT_PAD), jnp.float32).at[:, :d_output].set(
        params["b2"].reshape(1, d_output))
    return {
        "emb": params["emb"].astype(jnp.bfloat16),   # halves gather HBM/VMEM bytes
        "w1": params["w1"].astype(jnp.bfloat16),
        "b1": params["b1"].reshape(1, D).astype(jnp.float32),
        "w2p": w2p.astype(jnp.bfloat16),
        "b2p": b2p,
        "d_output": d_output,
    }


def s4_cross_encoder_forward(input_ids, lengths, prepared, labels=None, rate=4):
    del rate  # backbone is identity (see TODO at top), rate has no effect
    B, L = input_ids.shape
    V, D = prepared["emb"].shape
    d_output = prepared["d_output"]
    n_out = prepared["w2p"].shape[1]

    if lengths is None:
        lengths = jnp.full((B,), L, jnp.int32)

    TB = 8                                   # sublane-aligned batch tile
    n_b = pl.cdiv(B, TB)
    B_pad = n_b * TB

    ids_p = jnp.zeros((B_pad, L), jnp.int32).at[:B].set(input_ids.astype(jnp.int32))
    lens_p = jnp.zeros((B_pad, 1), jnp.int32).at[:B, 0].set(
        lengths.reshape(B).astype(jnp.int32))

    # --- Kernel 1: embedding gather + masked mean pooling, one grid step per
    # batch tile; whole bf16 table resident in VMEM (small-vocab fast path).
    pooled = pl.pallas_call(
        _pool_kernel,
        out_shape=jax.ShapeDtypeStruct((B_pad, D), jnp.float32),
        grid_spec=pltpu.PrefetchScalarGridSpec(
            num_scalar_prefetch=0,
            grid=(n_b,),
            in_specs=[
                pl.BlockSpec((TB, L), lambda i: (i, 0)),    # token ids (int32)
                pl.BlockSpec((TB, 1), lambda i: (i, 0)),    # lengths (int32)
                pl.BlockSpec((V, D), lambda i: (0, 0)),     # embedding table (bf16)
            ],
            out_specs=pl.BlockSpec((TB, D), lambda i: (i, 0)),
        ),
        compiler_params=pltpu.CompilerParams(
            dimension_semantics=("parallel",)),             # both v7x TCs
    )(ids_p, lens_p, prepared["emb"])

    # --- Kernel 2: decoder MLP, split out so its weights only occupy VMEM for
    # this tiny call and the pooling grid stays batch-parallel.
    # NOTE: at large D, pass vmem_limit_bytes explicitly (v5e default scoped
    # VMEM is 16 MiB); defaults are ample at these sizes.
    logits_padded = pl.pallas_call(
        _decoder_kernel,
        out_shape=jax.ShapeDtypeStruct((B_pad, n_out), jnp.float32),
        grid_spec=pltpu.PrefetchScalarGridSpec(
            num_scalar_prefetch=0,
            grid=(n_b,),
            in_specs=[
                pl.BlockSpec((TB, D), lambda i: (i, 0)),    # pooled activations
                pl.BlockSpec((D, D), lambda i: (0, 0)),     # W1 (bf16)
                pl.BlockSpec((1, D), lambda i: (0, 0)),     # b1 (f32)
                pl.BlockSpec((D, n_out), lambda i: (0, 0)),  # W2 lane-padded (bf16)
                pl.BlockSpec((1, n_out), lambda i: (0, 0)),  # b2 lane-padded (f32)
            ],
            out_specs=pl.BlockSpec((TB, n_out), lambda i: (i, 0)),
        ),
        compiler_params=pltpu.CompilerParams(
            dimension_semantics=("parallel",)),
    )(pooled, prepared["w1"], prepared["b1"], prepared["w2p"], prepared["b2p"])

    logits = logits_padded[:B, :d_output]

    loss = None
    if labels is not None:
        # nn.CrossEntropyLoss: mean NLL over the batch (tiny scalar glue in JAX).
        logp = jax.nn.log_softmax(logits, axis=-1)
        loss = -jnp.mean(jnp.take_along_axis(
            logp, labels.reshape(-1, 1).astype(jnp.int32), axis=-1))
    return loss, logits


def _reference_forward(input_ids, lengths, params, labels):
    """Pure-JAX f32 reference (backbone == identity) for a tolerance check."""
    D = params["emb"].shape[1]
    emb = params["emb"][input_ids] * (D ** 0.5)                         # (B, L, D)
    mask = (jnp.arange(input_ids.shape[1])[None, :] < lengths[:, None]).astype(jnp.float32)
    pooled = (emb * mask[:, :, None]).sum(1) / jnp.maximum(lengths, 1)[:, None]
    h = jnp.maximum(pooled @ params["w1"] + params["b1"], 0.0)
    logits = h @ params["w2"] + params["b2"]
    logp = jax.nn.log_softmax(logits, axis=-1)
    loss = -jnp.mean(jnp.take_along_axis(logp, labels[:, None], axis=-1))
    return loss, logits


if __name__ == "__main__":
    key = jax.random.PRNGKey(0)
    B, L, V, D = 2, 8, 64, 32          # batch, seq, n_tokens, d_model (d_output = 2)
    k_ids, k_emb, k_w1, k_b1, k_w2, k_b2 = jax.random.split(key, 6)

    input_ids = jax.random.randint(k_ids, (B, L), 0, V, dtype=jnp.int32)
    lengths = jnp.array([8, 5], dtype=jnp.int32)
    labels = jnp.array([0, 1], dtype=jnp.int32)

    # Deterministic synthetic parameters (shapes follow the module __init__;
    # decoder weights stored [in, out], i.e. transposed w.r.t. nn.Linear).
    params = {
        "emb": jax.random.normal(k_emb, (V, D), jnp.float32) * (D ** -0.5),
        "w1": jax.random.normal(k_w1, (D, D), jnp.float32) * 0.05,
        "b1": jax.random.normal(k_b1, (1, D), jnp.float32) * 0.01,
        "w2": jax.random.normal(k_w2, (D, 2), jnp.float32) * 0.05,
        "b2": jax.random.normal(k_b2, (1, 2), jnp.float32) * 0.01,
    }

    prepared = prepare_params(params)
    loss, logits = s4_cross_encoder_forward(input_ids, lengths, prepared, labels=labels)
    jax.block_until_ready((loss, logits))

    # Tolerance check vs f32 reference (bf16 MXU operands -> loose tolerances).
    ref_loss, ref_logits = _reference_forward(input_ids, lengths, params, labels)
    np.testing.assert_allclose(np.asarray(logits), np.asarray(ref_logits),
                               rtol=5e-2, atol=3e-2)
    np.testing.assert_allclose(float(loss), float(ref_loss), rtol=5e-2, atol=3e-2)

    print("KERNEL_OK")
</pallas_src>

<mosaic_0001>
module attributes {stable_mosaic.version = 11 : i64} {
  func.func @_pool_kernel(%arg0: i32, %arg1: memref<8x8xi32, #tpu.memory_space<vmem>>, %arg2: memref<8x1xi32, #tpu.memory_space<vmem>>, %arg3: memref<64x32xbf16, #tpu.memory_space<vmem>>, %arg4: memref<8x32xf32, #tpu.memory_space<vmem>>) attributes {dimension_semantics = [#tpu.dimension_semantics<parallel>], iteration_bounds = array<i64: 1>, scalar_prefetch = 0 : i64, scratch_operands = 0 : i64, tpu.core_type = #tpu.core_type<tc>, window_params = [{transform_indices = @transform_0, window_bounds = array<i64: 8, 8>}, {transform_indices = @transform_1, window_bounds = array<i64: 8, 1>}, {pipeline_mode = #tpu.pipeline_mode<synchronous>, transform_indices = @transform_2, window_bounds = array<i64: 64, 32>}, {transform_indices = @transform_3, window_bounds = array<i64: 8, 32>}]} {
    %c0 = arith.constant 0 : index
    %c0_0 = arith.constant 0 : index
    %0 = vector.load %arg1[%c0, %c0_0] : memref<8x8xi32, #tpu.memory_space<vmem>>, vector<8x8xi32>
    %c0_1 = arith.constant 0 : index
    %c0_2 = arith.constant 0 : index
    %1 = vector.load %arg2[%c0_1, %c0_2] : memref<8x1xi32, #tpu.memory_space<vmem>>, vector<8x1xi32>
    %2 = tpu.iota {dimensions = array<i32: 1>} : vector<8x64x8xi32>
    %3 = tpu.iota {dimensions = array<i32: 2>} : vector<8x64x8xi32>
    %4 = vector.shape_cast %0 : vector<8x8xi32> to vector<8x1x8xi32>
    %5 = vector.broadcast %4 : vector<8x1x8xi32> to vector<8x64x8xi32>
    %6 = arith.cmpi eq, %2, %5 : vector<8x64x8xi32>
    %7 = vector.shape_cast %1 : vector<8x1xi32> to vector<8x1x1xi32>
    %8 = vector.broadcast %7 : vector<8x1x1xi32> to vector<8x64x8xi32>
    %9 = arith.cmpi slt, %3, %8 : vector<8x64x8xi32>
    %10 = arith.andi %6, %9 : vector<8x64x8xi1>
    %11 = arith.extui %10 : vector<8x64x8xi1> to vector<8x64x8xi32>
    %12 = arith.sitofp %11 : vector<8x64x8xi32> to vector<8x64x8xf32>
    %cst = arith.constant dense<0.000000e+00> : vector<8x64xf32>
    %13 = vector.multi_reduction <add>, %12, %cst [2] : vector<8x64x8xf32> to vector<8x64xf32>
    %14 = arith.truncf %13 : vector<8x64xf32> to vector<8x64xbf16>
    %c0_3 = arith.constant 0 : index
    %c0_4 = arith.constant 0 : index
    %15 = vector.load %arg3[%c0_3, %c0_4] : memref<64x32xbf16, #tpu.memory_space<vmem>>, vector<64x32xbf16>
    %cst_5 = arith.constant dense<0.000000e+00> : vector<8x32xf32>
    %16 = tpu.matmul %14, %15, %cst_5 {dimension_numbers = #tpu.dot_dimension_numbers<[1], [0], [0], [1], [0, 0, 1, 1], [], []>} : vector<8x64xbf16>, vector<64x32xbf16>, vector<8x32xf32> -> vector<8x32xf32>
    %c1_i32 = arith.constant 1 : i32
    %17 = vector.broadcast %c1_i32 : i32 to vector<8x1xi32>
    %18 = arith.maxsi %1, %17 : vector<8x1xi32>
    %19 = arith.sitofp %18 : vector<8x1xi32> to vector<8x1xf32>
    %cst_6 = arith.constant 1.000000e+00 : f32
    %20 = vector.broadcast %cst_6 : f32 to vector<8x1xf32>
    %21 = arith.divf %20, %19 : vector<8x1xf32>
    %22 = vector.broadcast %21 : vector<8x1xf32> to vector<8x32xf32>
    %23 = arith.mulf %16, %22 : vector<8x32xf32>
    %cst_7 = arith.constant 5.65685415 : f32
    %24 = vector.broadcast %cst_7 : f32 to vector<8x32xf32>
    %25 = arith.mulf %23, %24 : vector<8x32xf32>
    %c0_8 = arith.constant 0 : index
    %c0_9 = arith.constant 0 : index
    %26 = vector.load %arg4[%c0_8, %c0_9] : memref<8x32xf32, #tpu.memory_space<vmem>>, vector<8x32xf32>
    tpu.vector_store %arg4[%c0_8, %c0_9], %25 {strides = array<i32>} : memref<8x32xf32, #tpu.memory_space<vmem>>, vector<8x32xf32>,
    return
  }
  func.func @transform_0(%arg0: i32) -> (i32, i32) {
    %c0_i32 = arith.constant 0 : i32
    %c0_i32_0 = arith.constant 0 : i32
    return %arg0, %c0_i32 : i32, i32
  }
  func.func @transform_1(%arg0: i32) -> (i32, i32) {
    %c0_i32 = arith.constant 0 : i32
    %c0_i32_0 = arith.constant 0 : i32
    return %arg0, %c0_i32 : i32, i32
  }
  func.func @transform_2(%arg0: i32) -> (i32, i32) {
    %c0_i32 = arith.constant 0 : i32
    %c0_i32_0 = arith.constant 0 : i32
    %c0_i32_1 = arith.constant 0 : i32
    return %c0_i32, %c0_i32_0 : i32, i32
  }
  func.func @transform_3(%arg0: i32) -> (i32, i32) {
    %c0_i32 = arith.constant 0 : i32
    %c0_i32_0 = arith.constant 0 : i32
    return %arg0, %c0_i32 : i32, i32
  }
}

</mosaic_0001>

<bundles_post_ra>
// kernel: tpu_custom_call.1
= control target key start
LH: loop header
LB: loop body
LE: loop exit
PB: predicated region body
PF: predicated region fallthrough
CT: control target
= control target key end

     0   :  { %v18_v0 = vlaneseq  ;;  %v1370_v1 = vmov 0   ;;  %v1371_v2 = vmov 1966171168   ;;  %s2406_s0 = inlined_call_operand.vmem [shape: s32[8,8], index: 0, kind: input, shape index: {}]   ;;  %s2407_s1 = inlined_call_operand.vmem [shape: s32[8,1], index: 1, kind: input, shape index: {}]   ;;  %s2408_s2 = inlined_call_operand.vmem [shape: bf16[64,32], index: 2, kind: input, shape index: {}]   ;;  %s2409_s3 = inlined_call_operand.hbm [shape: f32[8,32], index: 3, kind: output, shape index: {}]  }
   0x1   :  { %1336 = vset.pattern.permute.xlu0 %v1370_v1  ;;  %v31_v3 = vunpack.c.l.s4 %v1371_v2  ;;  %1337 = vset.pattern.permute.xlu1 %v1370_v1  ;;  %v1398_v4 = vld [vmem:[%s2407_s1] sm:$0xff] }
   0x2   :  { %v1401_v5 = vshrl.u32 %v18_v0, 7  ;;  %v174_v7 = vcombine.high %v1398_v4, %v1398_v4 }
   0x3   :  { %v32_v6 = vunpack.c.0.s8 %v31_v3 }
   0x4   :  { %8 = vsyncpa [#allocation3], 0  ;;  %v1407_v9 = vsub.s32 0, %v1401_v5  ;;  %v1372_v24 = vmov 0.0   ;;  %v16_v31 = vld [vmem:[%s2406_s0] sm:$0xff]  ;;  %v1426_v37 = vadd.s32 24, %v1401_v5 }
   0x5   :  { %v35_v8 = vsub.s32 %v32_v6, %v1401_v5  ;;  %1319 = vmatprep.subr.bf16.mxu0 %v1372_v24  ;;  %v29_v32 = vcombine.high %v16_v31, %v16_v31  ;;  %v1447_v48 = vadd.s32 8, %v1401_v5  ;;  %v1452_v50 = vand.u32 127, %v18_v0 }
   0x6   :  { %v1455_v51 = vadd.s32 16, %v1401_v5  ;;  %v1459_v52 = vadd.s32 32, %v1401_v5  ;;  %v1463_v54 = vadd.s32 40, %v1401_v5  ;;  %vm2410_vm6 = vcmask 64512  }
   0x7   :  { %v181_v10 = vrot.slane %v1398_v4, %v35_v8  ;;  %v188_v11 = vrot.slane %v174_v7, %v35_v8  ;;  %v43_v33 = vrot.slane %v29_v32, %v35_v8  ;;  %v36_v38 = vrot.slane %v16_v31, %v35_v8 }
   0x8   :  { %v1487_v61 = vadd.s32 56, %v1401_v5  ;;  %v2414_v62 = vmov 0  ;;  %v1508_v2 = vadd.s32 48, %v1401_v5 }
   0x9   :  { %v197_v12 = vrot.slane %v181_v10, %v35_v8  ;;  %v189_v13 = vcombine.high %v181_v10, %v181_v10  ;;  %v204_v14 = vrot.slane %v188_v11, %v35_v8  ;;  %v190_v15 = vcombine.high %v188_v11, %v188_v11 }
   0xa   :  { %v59_v34 = vrot.slane %v43_v33, %v35_v8  ;;  %v45_v39 = vcombine.high %v43_v33, %v43_v33  ;;  %v44_v40 = vcombine.high %v36_v38, %v36_v38  ;;  %v1444_v47 = vrot.slane %v36_v38, %v35_v8 }
   0xb   :  { %v226_v16 = vrot.slane %v197_v12, %v1407_v9  ;;  %v219_v17 = vcombine.high %v197_v12, %v197_v12  ;;  %v218_v18 = vrot.slane %v190_v15, %v35_v8  ;;  %v242_v19 = vrot.slane %v204_v14, %v1407_v9 }
   0xc   :  { %v211_v20 = vrot.slane %v189_v13, %v35_v8  ;;  %v220_v26 = vcombine.high %v204_v14, %v204_v14  ;;  %v75_v35 = vcombine.high %v59_v34, %v59_v34  ;;  %v1430_v41 = vrot.slane %v45_v39, %v35_v8 }
   0xd   :  { %256 = vperm.xlu0 %1336, %v226_v16   ;;  %v234_v21 = vrot.slane %v219_v17, %v1407_v9  ;;  %v246_v22 = vrot.slane %v218_v18, %v1407_v9  ;;  %v222_v28 = vcombine.high %v218_v18, %v218_v18  ;;  %v66_v42 = vrot.slane %v44_v40, %v35_v8 }
   0xe   :  { %v221_v23 = vcombine.high %v211_v20, %v211_v20  ;;  %v230_v25 = vrot.slane %v211_v20, %v1407_v9  ;;  %v250_v29 = vrot.slane %v220_v26, %v1407_v9  ;;  %v1423_v36 = vrot.slane %v75_v35, %v1407_v9 }
   0xf   :  { %262 = vperm.xlu1 %1337, %v234_v21   ;;  %v254_v30 = vrot.slane %v222_v28, %v1407_v9  ;;  %v76_v43 = vcombine.high %v66_v42, %v66_v42  ;;  %v77_v44 = vcombine.high %v1430_v41, %v1430_v41  ;;  %v81_v49 = vrot.slane %v1444_v47, %v1407_v9 }
  0x10   :  { %v238_v27 = vrot.slane %v221_v23, %v1407_v9  ;;  %v1472_v56 = vrot.slane %v59_v34, %v1407_v9  ;;  %v1533_v11 = vrot.slane %v66_v42, %v1407_v9  ;;  %v74_v15 = vcombine.high %v1444_v47, %v1444_v47 }
  0x11   :  { %268 = vperm.xlu0 %1336, %v242_v19   ;;  %v1435_v45 = vrot.slane %v76_v43, %v1407_v9  ;;  %v1438_v46 = vrot.slane %v77_v44, %v1407_v9  ;;  %vm111_vm3 = vcmp.eq.s32.totalorder %v1447_v48, %v81_v49  ;;  %vm110_vm4 = vcmp.eq.s32.totalorder %v1401_v5, %v81_v49 }
  0x12   :  { %vm112_vm7 = vcmp.eq.s32.totalorder %v1455_v51, %v81_v49  ;;  %vm113_vm9 = vcmp.eq.s32.totalorder %v1426_v37, %v81_v49  ;;  %vm114_vm11 = vcmp.eq.s32.totalorder %v1459_v52, %v81_v49  ;;  %vm115_vm13 = vcmp.eq.s32.totalorder %v1463_v54, %v81_v49 }
  0x13   :  { %271 = vperm.xlu1 %1337, %v246_v22   ;;  %v1591_v26 = vrot.slane %v74_v15, %v1407_v9  ;;  %v2440_v38 = vmov 0  ;;  %v2445_v42 = vmov 0  ;;  %v1680_v55 = vrot.slane %v1430_v41, %v1407_v9 }
  0x14   :  { %v2470_v14 = vmov 0  ;;  %v2473_v16 = vmov 0 }
  0x15   :  { %259 = vperm.xlu0 %1336, %v230_v25  }
  0x17   :  { %265 = vperm.xlu1 %1337, %v238_v27  }
  0x19   :  { %274 = vperm.xlu0 %1336, %v250_v29   ;;  %v2434_v29 = vmov 0 }
  0x1b   :  { %277 = vperm.xlu1 %1337, %v254_v30  }
  0x8c   :  { %v257_v53 = vpop.permute.xlu0 %256 }
  0x8d   :  { %vm1466_vm5 = vcmp.lt.s32.totalorder %v1452_v50, %v257_v53  ;;  %v2450_v53 = vmov 0 }
  0x8e   :  { %vm288_vm8 = vmand %vm111_vm3, %vm1466_vm5  ;;  %vm143_vm3 = vcmp.eq.s32.totalorder %v1447_v48, %v1472_v56  ;;  %v263_v32 = vpop.permute.xlu1 %262 }
  0x8f   :  { %v1246_v57 = vsel %vm288_vm8, 1.0, %v1372_v24  ;;  %vm287_vm10 = vmand %vm110_vm4, %vm1466_vm5  ;;  %vm1626_vm0 = vcmp.lt.s32.totalorder %v1452_v50, %v263_v32 }
  0x90   :  { %v269_v58 = vpop.permute.xlu0 %268  ;;  %v483_v59 = vsel %vm2410_vm6, %v1246_v57, 0.0  ;;  %v1245_v60 = vsel %vm287_vm10, 1.0, %v1372_v24  ;;  %vm289_vm12 = vmand %vm112_vm7, %vm1466_vm5  ;;  %vm142_vm7 = vcmp.eq.s32.totalorder %v1401_v5, %v1472_v56 }
  0x91   :  { %vm1490_vm14 = vcmp.lt.s32.totalorder %v1452_v50, %v269_v58  ;;  %484 = vadd.xlane.f32.xlu1 %v483_v59  ;;  %v480_v63 = vsel %vm2410_vm6, %v1245_v60, 0.0  ;;  %v1247_v0 = vsel %vm289_vm12, 1.0, %v1372_v24  ;;  %vm290_vm15 = vmand %vm113_vm9, %vm1466_vm5  ;;  %vm145_vm9 = vcmp.eq.s32.totalorder %v1426_v37, %v1472_v56 }
  0x92   :  { %v2415_v62 = vsel %vm1490_vm14, 4294967295, %v2414_v62  ;;  %481 = vadd.xlane.f32.xlu0 %v480_v63  ;;  %v1248_v1 = vsel %vm290_vm15, 1.0, %v1372_v24  ;;  %vm291_vm4 = vmand %vm114_vm11, %vm1466_vm5  ;;  %v486_v3 = vsel %vm2410_vm6, %v1247_v0, 0.0  ;;  %vm144_vm11 = vcmp.eq.s32.totalorder %v1455_v51, %v1472_v56  ;;  %v272_v60 = vpop.permute.xlu1 %271 }
  0x93   :  { %vm292_vm8 = vmand %vm115_vm13, %vm1466_vm5  ;;  %v489_v7 = vsel %vm2410_vm6, %v1248_v1, 0.0  ;;  %v1249_v8 = vsel %vm291_vm4, 1.0, %v1372_v24  ;;  %vm117_vm13 = vcmp.eq.s32.totalorder %v1487_v61, %v81_v49  ;;  %v2455_v59 = vmov 0 }
  0x94   :  { %vm1517_vm10 = vmand %vm143_vm3, %vm1490_vm14  ;;  %v260_v12 = vpop.permute.xlu0 %259  ;;  %v1250_v13 = vsel %vm292_vm8, 1.0, %v1372_v24  ;;  %vm116_vm3 = vcmp.eq.s32.totalorder %v1508_v2, %v81_v49  ;;  %v492_v17 = vsel %vm2410_vm6, %v1249_v8, 0.0  ;;  %v2458_v63 = vmov 0 }
  0x95   :  { %487 = vadd.xlane.f32.xlu1 %v486_v3  ;;  %vm1527_vm12 = vmand %vm142_vm7, %vm1490_vm14  ;;  %vm147_vm7 = vcmp.eq.s32.totalorder %v1463_v54, %v1472_v56  ;;  %vm1563_vm2 = vcmp.lt.s32.totalorder %v1452_v50, %v260_v12  ;;  %v495_v20 = vsel %vm2410_vm6, %v1250_v13, 0.0  ;;  %v1278_v23 = vsel %vm1517_vm10, 1.0, %v1372_v24 }
  0x96   :  { %490 = vadd.xlane.f32.xlu0 %v489_v7  ;;  %vm1538_vm15 = vmand %vm145_vm9, %vm1490_vm14  ;;  %vm146_vm9 = vcmp.eq.s32.totalorder %v1459_v52, %v1472_v56  ;;  %v1277_v21 = vsel %vm1527_vm12, 1.0, %v1372_v24  ;;  %vm119_vm10 = vcmp.eq.s32.totalorder %v1447_v48, %v1533_v11  ;;  %v579_v30 = vsel %vm2410_vm6, %v1278_v23, 0.0 }
  0x97   :  { %vm1547_vm4 = vmand %vm144_vm11, %vm1490_vm14  ;;  %v576_v28 = vsel %vm2410_vm6, %v1277_v21, 0.0  ;;  %v1280_v34 = vsel %vm1538_vm15, 1.0, %v1372_v24  ;;  %vm127_vm15 = vcmp.eq.s32.totalorder %v1447_v48, %v1591_v26  ;;  %v2462_v3 = vmov 0 }
  0x98   :  { %vm1556_vm8 = vmand %vm117_vm13, %vm1466_vm5  ;;  %vm118_vm13 = vcmp.eq.s32.totalorder %v1401_v5, %v1533_v11  ;;  %v1279_v31 = vsel %vm1547_vm4, 1.0, %v1372_v24  ;;  %v2467_v8 = vmov 0  ;;  %v275_v10 = vpop.permute.xlu0 %274 }
  0x99   :  { %493 = vadd.xlane.f32.xlu1 %v492_v17  ;;  %vm1573_vm11 = vmand %vm116_vm3, %vm1466_vm5  ;;  %vm148_vm5 = vcmp.eq.s32.totalorder %v1508_v2, %v1472_v56  ;;  %v1252_v49 = vsel %vm1556_vm8, 1.0, %v1372_v24  ;;  %vm123_vm8 = vcmp.eq.s32.totalorder %v1463_v54, %v1533_v11  ;;  %v2475_v17 = vmov 0 }
  0x9a   :  { %496 = vadd.xlane.f32.xlu0 %v495_v20  ;;  %vm1584_vm1 = vmand %vm147_vm7, %vm1490_vm14  ;;  %vm120_vm7 = vcmp.eq.s32.totalorder %v1455_v51, %v1533_v11  ;;  %v1251_v44 = vsel %vm1573_vm11, 1.0, %v1372_v24  ;;  %vm122_vm11 = vcmp.eq.s32.totalorder %v1459_v52, %v1533_v11  ;;  %v2480_v20 = vmov 0 }
  0x9b   :  { %vm1595_vm12 = vmand %vm146_vm9, %vm1490_vm14  ;;  %v1282_v0 = vsel %vm1584_vm1, 1.0, %v1372_v24  ;;  %vm151_vm1 = vcmp.eq.s32.totalorder %v1447_v48, %v1680_v55 }
  0x9c   :  { %vm1604_vm3 = vmand %vm118_vm13, %vm1563_vm2  ;;  %vm121_vm13 = vcmp.eq.s32.totalorder %v1426_v37, %v1533_v11  ;;  %v1281_v41 = vsel %vm1595_vm12, 1.0, %v1372_v24 }
  0x9d   :  { %v2435_v29 = vsel %vm1604_vm3, 4294967295, %v2434_v29  ;;  %577 = vadd.xlane.f32.xlu1 %v576_v28  ;;  %vm1616_vm9 = vmand %vm148_vm5, %vm1490_vm14  ;;  %vm126_vm5 = vcmp.eq.s32.totalorder %v1401_v5, %v1591_v26  ;;  %vm2444_vm14 = vcmask 64512  }
  0x9e   :  { %580 = vadd.xlane.f32.xlu0 %v579_v30  ;;  %vm1632_vm4 = vmand %vm119_vm10, %vm1563_vm2  ;;  %v582_v40 = vsel %vm2444_vm14, %v1279_v31, 0.0  ;;  %v1283_v13 = vsel %vm1616_vm9, 1.0, %v1372_v24  ;;  %vm152_vm9 = vcmp.eq.s32.totalorder %v1455_v51, %v1680_v55  ;;  %v266_v31 = vpop.permute.xlu1 %265 }
  0x9f   :  { %v2441_v38 = vsel %vm1632_vm4, 4294967295, %v2440_v38  ;;  %vm1640_vm6 = vmand %vm120_vm7, %vm1563_vm2  ;;  %vm128_vm4 = vcmp.eq.s32.totalorder %v1455_v51, %v1591_v26 }
  0xa0   :  { %vm1649_vm10 = vmand %vm121_vm13, %vm1563_vm2  ;;  %v1255_v22 = vsel %vm1640_vm6, 1.0, %v1372_v24  ;;  %vm132_vm6 = vcmp.eq.s32.totalorder %v1508_v2, %v1591_v26 }
  0xa1   :  { %v2446_v42 = vsel %vm1649_vm10, 4294967295, %v2445_v42  ;;  %vm2447_vm3 = vmmov %vm2444_vm14  ;;  %583 = vadd.xlane.f32.xlu1 %v582_v40  ;;  %vm129_vm14 = vcmp.eq.s32.totalorder %v1426_v37, %v1591_v26 }
  0xa2   :  { %v585_v43 = vsel %vm2447_vm3, %v1280_v34, 0.0  ;;  %vm1661_vm7 = vmand %vm126_vm5, %vm1626_vm0  ;;  %vm2454_vm5 = vcmask 64512  }
  0xa3   :  { %586 = vadd.xlane.f32.xlu0 %v585_v43  ;;  %vm1672_vm3 = vmand %vm127_vm15, %vm1626_vm0  ;;  %v498_v58 = vsel %vm2454_vm5, %v1251_v44, 0.0  ;;  %v1261_v25 = vsel %vm1661_vm7, 1.0, %v1372_v24 }
  0xa4   :  { %v2451_v53 = vsel %vm1672_vm3, 4294967295, %v2450_v53  ;;  %vm1684_vm13 = vmand %vm128_vm4, %vm1626_vm0  ;;  %vm130_vm3 = vcmp.eq.s32.totalorder %v1459_v52, %v1591_v26 }
  0xa5   :  { %vm1693_vm15 = vmand %vm129_vm14, %vm1626_vm0  ;;  %499 = vadd.xlane.f32.xlu1 %v498_v58  ;;  %vm131_vm14 = vcmp.eq.s32.totalorder %v1463_v54, %v1591_v26  ;;  %v1263_v44 = vsel %vm1684_vm13, 1.0, %v1372_v24  ;;  %vm2495_vm13 = vnez %v2451_v53 }
  0xa6   :  { %v2456_v59 = vsel %vm1693_vm15, 4294967295, %v2455_v59  ;;  %vm2457_vm10 = vmmov %vm2454_vm5  ;;  %vm2466_vm15 = vcmask 64512   ;;  %v1262_v35 = vsel %vm2495_vm13, 1.0, %v1372_v24 }
  0xa7   :  { %v501_v9 = vsel %vm2457_vm10, %v1252_v49, 0.0  ;;  %vm1705_vm4 = vmand %vm122_vm11, %vm1563_vm2  ;;  %vm1715_vm10 = vcmp.lt.s32.totalorder %v1452_v50, %v272_v60  ;;  %vm150_vm11 = vcmp.eq.s32.totalorder %v1401_v5, %v1680_v55  ;;  %v588_v7 = vsel %vm2466_vm15, %v1281_v41, 0.0 }
  0xa8   :  { %v2459_v63 = vsel %vm1705_vm4, 4294967295, %v2458_v63  ;;  %502 = vadd.xlane.f32.xlu0 %v501_v9  ;;  %vm1721_vm12 = vmand %vm123_vm8, %vm1563_vm2 }
  0xa9   :  { %v2463_v3 = vsel %vm1721_vm12, 4294967295, %v2462_v3  ;;  %vm1729_vm5 = vmand %vm130_vm3, %vm1626_vm0  ;;  %vm124_vm12 = vcmp.eq.s32.totalorder %v1508_v2, %v1533_v11  ;;  %589 = vadd.xlane.f32.xlu1 %v588_v7  ;;  %v278_v7 = vpop.permute.xlu1 %277 }
  0xaa   :  { %vm1738_vm8 = vmand %vm131_vm14, %vm1626_vm0  ;;  %vm2472_vm14 = vnez %v2435_v29 }
  0xab   :  { %v2468_v8 = vsel %vm1738_vm8, 4294967295, %v2467_v8  ;;  %vm2469_vm4 = vmmov %vm2466_vm15  ;;  %vm125_vm15 = vcmp.eq.s32.totalorder %v1487_v61, %v1533_v11  ;;  %v1253_v15 = vsel %vm2472_vm14, 1.0, %v1372_v24  ;;  %vm153_vm8 = vcmp.eq.s32.totalorder %v1426_v37, %v1680_v55 }
  0xac   :  { %v591_v12 = vsel %vm2469_vm4, %v1282_v0, 0.0  ;;  %vm1750_vm3 = vmand %vm150_vm11, %vm1715_vm10  ;;  %vm1776_vm14 = vcmp.lt.s32.totalorder %v1452_v50, %v275_v10 }
  0xad   :  { %v2471_v14 = vsel %vm1750_vm3, 4294967295, %v2470_v14  ;;  %592 = vadd.xlane.f32.xlu0 %v591_v12  ;;  %vm1761_vm4 = vmand %vm151_vm1, %vm1715_vm10  ;;  %vm2479_vm1 = vcmask 64512  }
  0xae   :  { %v2474_v16 = vsel %vm1761_vm4, 4294967295, %v2473_v16  ;;  %vm1769_vm11 = vmand %vm124_vm12, %vm1563_vm2  ;;  %v594_v18 = vsel %vm2479_vm1, %v1283_v13, 0.0  ;;  %vm158_vm12 = vcmp.eq.s32.totalorder %v1401_v5, %v1423_v36 }
  0xaf   :  { %v2476_v17 = vsel %vm1769_vm11, 4294967295, %v2475_v17  ;;  %vm1783_vm4 = vmand %vm125_vm15, %vm1563_vm2  ;;  %595 = vadd.xlane.f32.xlu1 %v594_v18  ;;  %vm159_vm2 = vcmp.eq.s32.totalorder %v1447_v48, %v1423_v36  ;;  %vm2485_vm15 = vnez %v2441_v38 }
  0xb0   :  { %v2481_v20 = vsel %vm1783_vm4, 4294967295, %v2480_v20  ;;  %vm2482_vm11 = vmmov %vm2479_vm1  ;;  %v1254_v19 = vsel %vm2485_vm15, 1.0, %v1372_v24  ;;  %vm160_vm15 = vcmp.eq.s32.totalorder %v1455_v51, %v1423_v36 }
  0xb1   :  { %v504_v21 = vsel %vm2482_vm11, %v1253_v15, 0.0  ;;  %vm1795_vm3 = vmand %vm152_vm9, %vm1715_vm10 }
  0xb2   :  { %505 = vadd.xlane.f32.xlu0 %v504_v21  ;;  %vm330_vm11 = vmand %vm153_vm8, %vm1715_vm10 }
  0xb3   :  { %v1288_v27 = vsel %vm330_vm11, 1.0, %v1372_v24  ;;  %vm335_vm9 = vmand %vm158_vm12, %vm1776_vm14  ;;  %vm154_vm11 = vcmp.eq.s32.totalorder %v1459_v52, %v1680_v55 }
  0xb4   :  { %vm2486_vm4 = vmmov %vm2479_vm1  ;;  %v1293_v30 = vsel %vm335_vm9, 1.0, %v1372_v24  ;;  %vm2489_vm9 = vnez %v2446_v42 }
  0xb5   :  { %v510_v28 = vsel %vm2486_vm4, %v1255_v22, 0.0  ;;  %vm2487_vm8 = vmmov %vm2479_vm1  ;;  %v1829_v33 = vsel %vm2479_vm1, %v1293_v30, 0.0  ;;  %v1256_v38 = vsel %vm2489_vm9, 1.0, %v1372_v24  ;;  %vm134_vm9 = vcmp.eq.s32.totalorder %v1401_v5, %v1435_v45 }
  0xb6   :  { %v1820_v29 = vsel %vm2487_vm8, %v1288_v27, 0.0  ;;  %vm336_vm7 = vmand %vm159_vm2, %vm1776_vm14  ;;  %511 = vadd.xlane.f32.xlu1 %v510_v28  ;;  %vm155_vm2 = vcmp.eq.s32.totalorder %v1463_v54, %v1680_v55 }
  0xb7   :  { %vm2488_vm12 = vmmov %vm2479_vm1  ;;  %v1294_v34 = vsel %vm336_vm7, 1.0, %v1372_v24 }
  0xb8   :  { %v507_v32 = vsel %vm2488_vm12, %v1254_v19, 0.0  ;;  %vm309_vm4 = vmand %vm132_vm6, %vm1626_vm0  ;;  %v1844_v40 = vsel %vm2479_vm1, %v1294_v34, 0.0  ;;  %vm2491_vm6 = vcmp.eq.s32.totalorder %v1487_v61, %v1591_v26 }
  0xb9   :  { %508 = vadd.xlane.f32.xlu0 %v507_v32  ;;  %vm2490_vm8 = vmmov %vm2479_vm1  ;;  %v1267_v43 = vsel %vm309_vm4, 1.0, %v1372_v24 }
  0xba   :  { %v528_v39 = vsel %vm2490_vm8, %v1261_v25, 0.0  ;;  %vm310_vm7 = vmand %vm2491_vm6, %vm1626_vm0  ;;  %vm1867_vm0 = vcmp.lt.s32.totalorder %v1452_v50, %v266_v31 }
  0xbb   :  { %vm2492_vm12 = vmmov %vm2479_vm1  ;;  %v1268_v47 = vsel %vm310_vm7, 1.0, %v1372_v24  ;;  %529 = vadd.xlane.f32.xlu1 %v528_v39  ;;  %v1265_v39 = vsel %vm1729_vm5, 1.0, %v1372_v24 }
  0xbc   :  { %v1856_v42 = vsel %vm2492_vm12, %v1267_v43, 0.0  ;;  %vm337_vm4 = vmand %vm160_vm15, %vm1776_vm14  ;;  %vm2497_vm15 = vcmp.eq.s32.totalorder %v1426_v37, %v1423_v36 }
  0xbd   :  { %vm2496_vm8 = vmmov %vm2479_vm1  ;;  %v1295_v57 = vsel %vm337_vm4, 1.0, %v1372_v24  ;;  %vm135_vm4 = vcmp.eq.s32.totalorder %v1447_v48, %v1435_v45 }
  0xbe   :  { %v1875_v49 = vsel %vm2496_vm8, %v1268_v47, 0.0  ;;  %vm338_vm1 = vmand %vm2497_vm15, %vm1776_vm14 }
  0xbf   :  { %vm2498_vm6 = vmmov %vm2496_vm8  ;;  %v1296_v53 = vsel %vm338_vm1, 1.0, %v1372_v24 }
  0xc0   :  { %v513_v58 = vsel %vm2498_vm6, %v1256_v38, 0.0  ;;  %vm2499_vm7 = vmmov %vm2498_vm6 }
  0xc1   :  { %v1885_v9 = vsel %vm2499_vm7, %v1295_v57, 0.0  ;;  %vm331_vm12 = vmand %vm154_vm11, %vm1715_vm10  ;;  %514 = vadd.xlane.f32.xlu0 %v513_v58  ;;  %vm136_vm11 = vcmp.eq.s32.totalorder %v1455_v51, %v1435_v45 }
  0xc2   :  { %vm2500_vm13 = vmmov %vm2498_vm6  ;;  %v1289_v0 = vsel %vm331_vm12, 1.0, %v1372_v24 }
  0xc3   :  { %v534_v41 = vsel %vm2500_vm13, %v1263_v44, 0.0  ;;  %vm2501_vm8 = vmmov %vm2498_vm6  ;;  %vm138_vm13 = vcmp.eq.s32.totalorder %v1459_v52, %v1435_v45 }
  0xc4   :  { %v1897_v60 = vsel %vm2501_vm8, %v1296_v53, 0.0  ;;  %vm332_vm15 = vmand %vm155_vm2, %vm1715_vm10  ;;  %vm139_vm8 = vcmp.eq.s32.totalorder %v1463_v54, %v1435_v45  ;;  %535 = vadd.xlane.f32.xlu1 %v534_v41 }
  0xc5   :  { %vm2502_vm1 = vmmov %vm2498_vm6  ;;  %v1290_v13 = vsel %vm332_vm15, 1.0, %v1372_v24  ;;  %vm2505_vm15 = vnez %v2459_v63 }
  0xc6   :  { %v531_v10 = vsel %vm2502_vm1, %v1262_v35, 0.0  ;;  %vm2503_vm6 = vmmov %vm2502_vm1  ;;  %v1257_v21 = vsel %vm2505_vm15, 1.0, %v1372_v24 }
  0xc7   :  { %v1909_v12 = vsel %vm2503_vm6, %v1289_v0, 0.0  ;;  %vm311_vm7 = vmand %vm134_vm9, %vm1867_vm0  ;;  %vm1942_vm6 = vcmp.lt.s32.totalorder %v1452_v50, %v278_v7  ;;  %532 = vadd.xlane.f32.xlu0 %v531_v10 }
  0xc8   :  { %vm2504_vm12 = vmmov %vm2502_vm1  ;;  %v1269_v18 = vsel %vm311_vm7, 1.0, %v1372_v24  ;;  %vm2509_vm7 = vnez %v2456_v59 }
  0xc9   :  { %v1918_v15 = vsel %vm2504_vm12, %v1290_v13, 0.0  ;;  %vm312_vm2 = vmand %vm135_vm4, %vm1867_vm0  ;;  %v1264_v63 = vsel %vm2509_vm7, 1.0, %v1372_v24  ;;  %vm140_vm7 = vcmp.eq.s32.totalorder %v1508_v2, %v1435_v45 }
  0xca   :  { %vm2506_vm9 = vmmov %vm2502_vm1  ;;  %v1270_v19 = vsel %vm312_vm2, 1.0, %v1372_v24  ;;  %vm166_vm1 = vcmp.eq.s32.totalorder %v1401_v5, %v1438_v46 }
  0xcb   :  { %v1931_v22 = vsel %vm2506_vm9, %v1269_v18, 0.0  ;;  %vm313_vm4 = vmand %vm136_vm11, %vm1867_vm0  ;;  %vm2511_vm11 = vcmp.eq.s32.totalorder %v1426_v37, %v1435_v45 }
  0xcc   :  { %vm2510_vm12 = vmmov %vm2506_vm9  ;;  %v1271_v28 = vsel %vm313_vm4, 1.0, %v1372_v24  ;;  %vm167_vm4 = vcmp.eq.s32.totalorder %v1447_v48, %v1438_v46 }
  0xcd   :  { %v1950_v27 = vsel %vm2510_vm12, %v1270_v19, 0.0  ;;  %vm314_vm2 = vmand %vm2511_vm11, %vm1867_vm0  ;;  %v516_v59 = vsel %vm2510_vm12, %v1257_v21, 0.0 }
  0xce   :  { %vm2512_vm15 = vmmov %vm2506_vm9  ;;  %v1272_v31 = vsel %vm314_vm2, 1.0, %v1372_v24  ;;  %517 = vadd.xlane.f32.xlu1 %v516_v59 }
  0xcf   :  { %v1959_v30 = vsel %vm2512_vm15, %v1271_v28, 0.0  ;;  %vm315_vm9 = vmand %vm138_vm13, %vm1867_vm0  ;;  %vm141_vm13 = vcmp.eq.s32.totalorder %v1487_v61, %v1435_v45 }
  0xd0   :  { %vm2513_vm11 = vmmov %vm2510_vm12  ;;  %v1273_v34 = vsel %vm315_vm9, 1.0, %v1372_v24  ;;  %vm2516_vm9 = vnez %v2463_v3 }
  0xd1   :  { %v1973_v32 = vsel %vm2513_vm11, %v1272_v31, 0.0  ;;  %vm316_vm2 = vmand %vm139_vm8, %vm1867_vm0  ;;  %v1258_v47 = vsel %vm2516_vm9, 1.0, %v1372_v24 }
  0xd2   :  { %vm2514_vm15 = vmmov %vm2513_vm11  ;;  %v1274_v44 = vsel %vm316_vm2, 1.0, %v1372_v24  ;;  %vm168_vm2 = vcmp.eq.s32.totalorder %v1455_v51, %v1438_v46 }
  0xd3   :  { %v537_v38 = vsel %vm2514_vm15, %v1264_v63, 0.0  ;;  %vm2515_vm12 = vmmov %vm2513_vm11  ;;  %v2000_v35 = vsel %vm2513_vm11, %v1274_v44, 0.0 }
  0xd4   :  { %v1988_v43 = vsel %vm2515_vm12, %v1273_v34, 0.0  ;;  %vm343_vm8 = vmand %vm166_vm1, %vm1942_vm6  ;;  %538 = vadd.xlane.f32.xlu0 %v537_v38  ;;  %vm162_vm12 = vcmp.eq.s32.totalorder %v1459_v52, %v1423_v36 }
  0xd5   :  { %v1301_v6 = vsel %vm343_vm8, 1.0, %v1372_v24  ;;  %vm344_vm5 = vmand %vm167_vm4, %vm1942_vm6 }
  0xd6   :  { %vm2517_vm1 = vmmov %vm2513_vm11  ;;  %v1302_v3 = vsel %vm344_vm5, 1.0, %v1372_v24  ;;  %vm149_vm11 = vcmp.eq.s32.totalorder %v1487_v61, %v1472_v56  ;;  %vm2521_vm5 = vnez %v2471_v14 }
  0xd7   :  { %v2011_v57 = vsel %vm2517_vm1, %v1301_v6, 0.0  ;;  %vm317_vm15 = vmand %vm140_vm7, %vm1867_vm0  ;;  %v1285_v0 = vsel %vm2521_vm5, 1.0, %v1372_v24  ;;  %vm163_vm5 = vcmp.eq.s32.totalorder %v1463_v54, %v1423_v36 }
  0xd8   :  { %vm2518_vm8 = vmmov %vm2517_vm1  ;;  %v1275_v53 = vsel %vm317_vm15, 1.0, %v1372_v24 }
  0xd9   :  { %v540_v48 = vsel %vm2518_vm8, %v1265_v39, 0.0  ;;  %vm2519_vm4 = vmmov %vm2517_vm1  ;;  %v2038_v7 = vsel %vm2517_vm1, %v1275_v53, 0.0  ;;  %vm2524_vm8 = vcmp.eq.s32.totalorder %v1426_v37, %v1438_v46  ;;  %v1287_v39 = vsel %vm1795_vm3, 1.0, %v1372_v24 }
  0xda   :  { %v2023_v58 = vsel %vm2519_vm4, %v1302_v3, 0.0  ;;  %vm318_vm9 = vmand %vm141_vm13, %vm1867_vm0  ;;  %541 = vadd.xlane.f32.xlu1 %v540_v48  ;;  %vm2522_vm13 = vnez %v2468_v8 }
  0xdb   :  { %vm2520_vm7 = vmmov %vm2517_vm1  ;;  %v1276_v10 = vsel %vm318_vm9, 1.0, %v1372_v24  ;;  %v1266_v45 = vsel %vm2522_vm13, 1.0, %v1372_v24  ;;  %vm156_vm9 = vcmp.eq.s32.totalorder %v1508_v2, %v1680_v55 }
  0xdc   :  { %v519_v41 = vsel %vm2520_vm7, %v1258_v47, 0.0  ;;  %vm345_vm0 = vmand %vm168_vm2, %vm1942_vm6 }
  0xdd   :  { %520 = vadd.xlane.f32.xlu0 %v519_v41  ;;  %vm2523_vm15 = vmmov %vm2517_vm1  ;;  %v1303_v14 = vsel %vm345_vm0, 1.0, %v1372_v24 }
  0xde   :  { %v2050_v26 = vsel %vm2523_vm15, %v1276_v10, 0.0  ;;  %vm346_vm4 = vmand %vm2524_vm8, %vm1942_vm6  ;;  %vm2528_vm15 = vnez %v2415_v62  ;;  %v840_v10 = vadd.s32 4294967256, %v1452_v50 }
  0xdf   :  { %vm2525_vm2 = vmmov %vm2517_vm1  ;;  %v1304_v8 = vsel %vm346_vm4, 1.0, %v1372_v24  ;;  %vm170_vm1 = vcmp.eq.s32.totalorder %v1459_v52, %v1438_v46 }
  0xe0   :  { %v2061_v51 = vsel %vm2525_vm2, %v1303_v14, 0.0  ;;  %vm339_vm7 = vmand %vm162_vm12, %vm1776_vm14  ;;  %vm157_vm12 = vcmp.eq.s32.totalorder %v1487_v61, %v1680_v55 }
  0xe1   :  { %vm2526_vm0 = vmmov %vm2525_vm2  ;;  %v1297_v18 = vsel %vm339_vm7, 1.0, %v1372_v24  ;;  %vm2530_vm2 = vnez %v2476_v17  ;;  %vm2531_vm7 = vnez %v2474_v16 }
  0xe2   :  { %v600_v37 = vsel %vm2526_vm0, %v1285_v0, 0.0  ;;  %vm2527_vm13 = vmmov %vm2526_vm0  ;;  %v1259_v19 = vsel %vm2530_vm2, 1.0, %v1372_v24  ;;  %v2090_v63 = vsel %vm2526_vm0, %v1297_v18, 0.0  ;;  %v1286_v56 = vsel %vm2531_vm7, 1.0, %v1372_v24 }
  0xe3   :  { %v2075_v13 = vsel %vm2527_vm13, %v1304_v8, 0.0  ;;  %vm326_vm8 = vmand %vm149_vm11, %vm2528_vm15  ;;  %601 = vadd.xlane.f32.xlu1 %v600_v37  ;;  %vm171_vm2 = vcmp.eq.s32.totalorder %v1463_v54, %v1438_v46 }
  0xe4   :  { %vm2529_vm4 = vmmov %vm2526_vm0  ;;  %v1284_v28 = vsel %vm326_vm8, 1.0, %v1372_v24  ;;  %vm164_vm8 = vcmp.eq.s32.totalorder %v1508_v2, %v1423_v36 }
  0xe5   :  { %v543_v21 = vsel %vm2529_vm4, %v1266_v45, 0.0  ;;  %vm333_vm11 = vmand %vm156_vm9, %vm1715_vm10 }
  0xe6   :  { %544 = vadd.xlane.f32.xlu0 %v543_v21  ;;  %vm2532_vm13 = vmmov %vm2526_vm0  ;;  %v1291_v17 = vsel %vm333_vm11, 1.0, %v1372_v24 }
  0xe7   :  { %v2102_v62 = vsel %vm2532_vm13, %v1284_v28, 0.0  ;;  %vm340_vm15 = vmand %vm163_vm5, %vm1776_vm14  ;;  %v1342_v28 = vld [vmem:[%s2408_s2 + $0x10] sm:$0xff]  }
  0xe8   :  { %vm2533_vm9 = vmmov %vm2526_vm0  ;;  %v1298_v59 = vsel %vm340_vm15, 1.0, %v1372_v24  ;;  %vm165_vm0 = vcmp.eq.s32.totalorder %v1487_v61, %v1423_v36 }
  0xe9   :  { %v618_v31 = vsel %vm2533_vm9, %v1291_v17, 0.0  ;;  %vm347_vm4 = vmand %vm170_vm1, %vm1942_vm6  ;;  %vm172_vm1 = vcmp.eq.s32.totalorder %v1508_v2, %v1438_v46 }
  0xea   :  { %vm2534_vm5 = vmmov %vm2533_vm9  ;;  %v1305_v38 = vsel %vm347_vm4, 1.0, %v1372_v24  ;;  %vm173_vm4 = vcmp.eq.s32.totalorder %v1487_v61, %v1438_v46 }
  0xeb   :  { %v522_v16 = vsel %vm2534_vm5, %v1259_v19, 0.0  ;;  %vm2535_vm11 = vmmov %vm2534_vm5  ;;  %v2238_v19 = vsub.s32 %v840_v10, %v1401_v5 }
  0xec   :  { %v639_v34 = vsel %vm2535_vm11, %v1298_v59, 0.0  ;;  %vm334_vm7 = vmand %vm157_vm12, %vm1715_vm10  ;;  %523 = vadd.xlane.f32.xlu1 %v522_v16  ;;  %vm2538_vm12 = vnez %v2481_v20 }
  0xed   :  { %vm2536_vm13 = vmmov %vm2534_vm5  ;;  %v1292_v47 = vsel %vm334_vm7, 1.0, %v1372_v24  ;;  %v1260_v55 = vsel %vm2538_vm12, 1.0, %v1372_v24 }
  0xee   :  { %v603_v52 = vsel %vm2536_vm13, %v1286_v56, 0.0  ;;  %vm2537_vm15 = vmmov %vm2534_vm5 }
  0xef   :  { %v660_v44 = vsel %vm2537_vm15, %v1305_v38, 0.0  ;;  %vm341_vm10 = vmand %vm164_vm8, %vm1776_vm14  ;;  %604 = vadd.xlane.f32.xlu0 %v603_v52 }
  0xf0   :  { %vm2539_vm9 = vmmov %vm2534_vm5  ;;  %v1299_v23 = vsel %vm341_vm10, 1.0, %v1372_v24 }
  0xf1   :  { %v621_v1 = vsel %vm2539_vm9, %v1292_v47, 0.0  ;;  %vm348_vm3 = vmand %vm171_vm2, %vm1942_vm6  ;;  %v642_v6 = vsel %vm2534_vm5, %v1299_v23, 0.0  ;;  %vm831_vm9 = vcmask 261312  }
  0xf2   :  { %v1306_v3 = vsel %vm348_vm3, 1.0, %v1372_v24  ;;  %vm349_vm8 = vmand %vm172_vm1, %vm1942_vm6  ;;  %vm1373_vm3 = vmmov 0  }
  0xf3   :  { %vm2540_vm11 = vmmov %vm2534_vm5  ;;  %v1307_v54 = vsel %vm349_vm8, 1.0, %v1372_v24  ;;  %1327 = vmatprep.mubr.msk.bf16.mxu0 %vm1373_vm3, %v1372_v24  ;;  %vm852_vm8 = vcmask 458112  }
  0xf4   :  { %v606_v20 = vsel %vm2540_vm11, %v1287_v39, 0.0  ;;  %vm2541_vm7 = vmmov %vm2534_vm5  ;;  %v1343_v39 = vld [vmem:[%s2408_s2 + $0x18] sm:$0xff]   ;;  %vm859_vm11 = vcmask 523712  }
  0xf5   :  { %v663_v48 = vsel %vm2541_vm7, %v1306_v3, 0.0  ;;  %vm342_vm2 = vmand %vm165_vm0, %vm1776_vm14  ;;  %607 = vadd.xlane.f32.xlu1 %v606_v20  ;;  %vm1217_vm14 = vcmp.gt.s32.totalorder %v1398_v4, 1  ;;  %vm824_vm0 = vcmask 195712   ;;  %v847_v3 = vadd.s32 4294967248, %v1452_v50 }
  0xf6   :  { %vm2542_vm13 = vmmov %vm2534_vm5  ;;  %v1300_v46 = vsel %vm342_vm2, 1.0, %v1372_v24  ;;  %v1218_v36 = vsel %vm1217_vm14, %v1398_v4, 1  ;;  %v2209_v4 = vsub.s32 %v1452_v50, %v1401_v5  ;;  %vm1134_vm7 = vcmask 1041409  }
  0xf7   :  { %v525_v53 = vsel %vm2542_vm13, %v1260_v55, 0.0  ;;  %vm2543_vm15 = vmmov %vm2534_vm5  ;;  %v1219_v61 = vcvt.s32.f32 %v1218_v36  ;;  %vm1136_vm2 = vcmask 1042434   ;;  %vm1138_vm13 = vcmask 1043459  }
  0xf8   :  { %v666_v41 = vsel %vm2543_vm15, %v1307_v54, 0.0  ;;  %vm350_vm1 = vmand %vm173_vm4, %vm1942_vm6  ;;  %526 = vadd.xlane.f32.xlu0 %v525_v53  ;;  %vm817_vm6 = vcmask 130112   ;;  %vm838_vm4 = vcmask 326912   ;;  %v854_v53 = vadd.s32 4294967240, %v1452_v50 }
  0xf9   :  { %vm2544_vm10 = vmmov %vm2534_vm5  ;;  %v1308_v0 = vsel %vm350_vm1, 1.0, %v1372_v24  ;;  %625 = vadd.xlane.f32.xlu1 %v1829_v33  ;;  %1344 = vrcp.f32 %v1219_v61  ;;  %v812_v33 = vadd.s32 4294967288, %v1452_v50  ;;  %vm1140_vm15 = vcmask 1044484  }
  0xfa   :  { %v645_v2 = vsel %vm2544_vm10, %v1300_v46, 0.0  ;;  %vm2545_vm12 = vmmov %vm2534_vm5  ;;  %vm845_vm5 = vcmask 392512   ;;  %vm1142_vm1 = vcmask 1045509   ;;  %vm1144_vm10 = vcmask 1046534  }
  0xfb   :  { %v669_v11 = vsel %vm2545_vm12, %v1308_v0, 0.0  ;;  %vm1146_vm12 = vcmask 1047559   ;;  %vm1173_vm14 = vcmask 523264  }
  0xfc   :  { %610 = vadd.xlane.f32.xlu0 %v1820_v29 }
  0xfd   :  { %547 = vadd.xlane.f32.xlu1 %v1856_v42 }
 0x100   :  { %628 = vadd.xlane.f32.xlu0 %v1844_v40 }
 0x101   :  { %631 = vadd.xlane.f32.xlu1 %v1885_v9  ;;  %v826_v9 = vadd.s32 4294967272, %v1452_v50 }
 0x103   :  { %v1345_v29 = vpop.eup %1344 }
 0x104   :  { %550 = vadd.xlane.f32.xlu0 %v1875_v49  ;;  %v819_v49 = vadd.s32 4294967280, %v1452_v50 }
 0x105   :  { %613 = vadd.xlane.f32.xlu1 %v1909_v12 }
 0x108   :  { %634 = vadd.xlane.f32.xlu0 %v1897_v60  ;;  %v2212_v60 = vsub.s32 %v812_v33, %v1401_v5 }
 0x109   :  { %553 = vadd.xlane.f32.xlu1 %v1931_v22 }
 0x10c   :  { %616 = vadd.xlane.f32.xlu0 %v1918_v15 }
 0x10d   :  { %559 = vadd.xlane.f32.xlu1 %v1959_v30  ;;  %v2218_v30 = vsub.s32 %v826_v9, %v1401_v5 }
 0x110   :  { %556 = vadd.xlane.f32.xlu0 %v1950_v27  ;;  %v2215_v27 = vsub.s32 %v819_v49, %v1401_v5 }
 0x111   :  { %565 = vadd.xlane.f32.xlu1 %v1988_v43  ;;  %v833_v43 = vadd.s32 4294967264, %v1452_v50 }
 0x113   :  { %v2230_v8 = vsub.s32 %v833_v43, %v1401_v5 }
 0x114   :  { %562 = vadd.xlane.f32.xlu0 %v1973_v32 }
 0x115   :  { %649 = vadd.xlane.f32.xlu1 %v2011_v57 }
 0x118   :  { %568 = vadd.xlane.f32.xlu0 %v2000_v35  ;;  %v1340_v35 = vld [vmem:[%s2408_s2] sm:$0xff]  }
 0x119   :  { %571 = vadd.xlane.f32.xlu1 %v2038_v7  ;;  %1320 = vmatpush3.bf16.msra.mxu0 %v1340_v35 }
 0x11a   :  { %1321 = vmatprep.subr.bf16.mxu0 %v1372_v24 }
 0x11c   :  { %652 = vadd.xlane.f32.xlu0 %v2023_v58 }
 0x11d   :  { %655 = vadd.xlane.f32.xlu1 %v2061_v51 }
 0x11e   :  { %v485_v40 = vpop.xlane.xlu1 %484 }
 0x11f   :  { %v482_v42 = vpop.xlane.xlu0 %481 }
 0x120   :  { %574 = vadd.xlane.f32.xlu0 %v2050_v26  ;;  %v672_v12 = vpack.c.bf16 %v485_v40, %v482_v42 }
 0x121   :  { %637 = vadd.xlane.f32.xlu1 %v2090_v63 }
 0x122   :  { %v744_v15 = vunpack.c.l.b16 %v672_v12  ;;  %v745_v22 = vunpack.c.h.b16 %v672_v12  ;;  %v488_v25 = vpop.xlane.xlu1 %487 }
 0x123   :  { %v491_v32 = vpop.xlane.xlu0 %490 }
 0x124   :  { %658 = vadd.xlane.f32.xlu0 %v2075_v13  ;;  %v811_v57 = vrot.slane %v744_v15, %v2209_v4  ;;  %v816_v58 = vrot.slane %v745_v22, %v2212_v60  ;;  %v673_v7 = vpack.c.bf16 %v491_v32, %v488_v25  ;;  %v1341_v13 = vld [vmem:[%s2408_s2 + $0x8] sm:$0xff]   ;;  %s1374_s2 = smov [#allocation2]  }
 0x125   :  { %619 = vadd.xlane.f32.xlu1 %v618_v31  ;;  %1322 = vmatpush3.bf16.msra.mxu0 %v1341_v13  ;;  %s1237_s22 = sshll.u32 %s1374_s2, 4  ;;  %s1238_s22 = int_to_ptr.vmem [resolvable:$true] %s1237_s22 }
 0x126   :  { %v818_v45 = vsel %vm817_vm6, %v816_v58, %v811_v57  ;;  %v746_v26 = vunpack.c.l.b16 %v673_v7  ;;  %v747_v14 = vunpack.c.h.b16 %v673_v7  ;;  %v494_v51 = vpop.xlane.xlu1 %493  ;;  %1323 = vmatprep.subr.bf16.mxu0 %v1372_v24  ;;  %s1346_s23 = scalar_lea.vmem %s1238_s22, 128  ;;  %p1351_p1 = scmp.lt.s32.totalorder %s1238_s22, %s1238_s22 }
 0x127   :  { %v497_v37 = vpop.xlane.xlu0 %496  ;;  %p1347_p0 = scmp.ne.s32.totalorder %s1238_s22, %s1346_s23  ;;  %p1352_p2 = scmp.lt.s32.totalorder %s1346_s23, %s1346_s23 }
 0x128   :  { %598 = vadd.xlane.f32.xlu0 %v2102_v62  ;;  %v823_v18 = vrot.slane %v746_v26, %v2215_v27  ;;  %v830_v21 = vrot.slane %v747_v14, %v2218_v30  ;;  %v674_v63 = vpack.c.bf16 %v497_v37, %v494_v51 }
 0x129   :  { %661 = vadd.xlane.f32.xlu1 %v660_v44  ;;  %1324 = vmatpush3.bf16.msra.mxu0 %v1342_v28  ;;  %p1353_p3 = por %p1352_p2, %p1351_p1 }
 0x12a   :  { %v825_v56 = vsel %vm824_vm0, %v823_v18, %v818_v45  ;;  %v748_v62 = vunpack.c.l.b16 %v674_v63  ;;  %v749_v17 = vunpack.c.h.b16 %v674_v63  ;;  %v578_v31 = vpop.xlane.xlu1 %577  ;;  %1325 = vmatprep.subr.bf16.mxu0 %v1372_v24  ;;  %v2261_v24 = vsub.s32 %v847_v3, %v1401_v5 }
 0x12b   :  { %v832_v59 = vsel %vm831_vm9, %v830_v21, %v825_v56  ;;  %v581_v16 = vpop.xlane.xlu0 %580  ;;  %p1354_p4 = pnand %p1353_p3, %p1347_p0 }
 0x12c   :  { %640 = vadd.xlane.f32.xlu0 %v639_v34  ;;  %v837_v34 = vrot.slane %v748_v62, %v2230_v8  ;;  %v844_v38 = vrot.slane %v749_v17, %v2238_v19  ;;  %v688_v52 = vpack.c.bf16 %v581_v16, %v578_v31 }
 0x12d   :  { %643 = vadd.xlane.f32.xlu1 %v642_v6  ;;  %1326 = vmatpush3.bf16.msra.mxu0 %v1343_v39 }
 0x12e   :  { %v839_v44 = vsel %vm838_vm4, %v837_v34, %v832_v59  ;;  %v776_v47 = vunpack.c.l.b16 %v688_v52  ;;  %v777_v55 = vunpack.c.h.b16 %v688_v52 }
 0x12f   :  { %v846_v23 = vsel %vm845_vm5, %v844_v38, %v839_v44 }
 0x130   :  { %622 = vadd.xlane.f32.xlu0 %v621_v1  ;;  %v584_v1 = vpop.xlane.xlu1 %583  ;;  %v587_v6 = vpop.xlane.xlu0 %586  ;;  %v981_v20 = vrot.slane %v776_v47, %v2209_v4 }
 0x131   :  { %667 = vadd.xlane.f32.xlu1 %v666_v41  ;;  %v689_v54 = vpack.c.bf16 %v587_v6, %v584_v1 }
 0x133   :  { %v778_v46 = vunpack.c.l.b16 %v689_v54 }
 0x134   :  { %664 = vadd.xlane.f32.xlu0 %v663_v48  ;;  %v985_v48 = vrot.slane %v777_v55, %v2212_v60  ;;  %v500_v0 = vpop.xlane.xlu1 %499 }
 0x135   :  { %v990_v36 = vrot.slane %v778_v46, %v2215_v27 }
 0x136   :  { %v986_v41 = vsel %vm817_vm6, %v985_v48, %v981_v20 }
 0x137   :  { %v991_v50 = vsel %vm824_vm0, %v990_v36, %v986_v41 }
 0x138   :  { %646 = vadd.xlane.f32.xlu0 %v645_v2  ;;  %v779_v2 = vunpack.c.h.b16 %v689_v54  ;;  %v590_v49 = vpop.xlane.xlu1 %589 }
 0x13a   :  { %v995_v61 = vrot.slane %v779_v2, %v2218_v30 }
 0x13c   :  { %670 = vadd.xlane.f32.xlu0 %v669_v11  ;;  %v503_v11 = vpop.xlane.xlu0 %502  ;;  %v996_v9 = vsel %vm831_vm9, %v995_v61, %v991_v50  ;;  %v2273_v35 = vpop.xlane.xlu1 %595 }
 0x13d   :  { %v675_v33 = vpack.c.bf16 %v503_v11, %v500_v0 }
 0x13f   :  { %v750_v40 = vunpack.c.l.b16 %v675_v33  ;;  %v751_v42 = vunpack.c.h.b16 %v675_v33 }
 0x140   :  { %v593_v12 = vpop.xlane.xlu0 %592 }
 0x141   :  { %v851_v15 = vrot.slane %v750_v40, %v2261_v24  ;;  %v690_v25 = vpack.c.bf16 %v593_v12, %v590_v49 }
 0x142   :  { %1224 = vperm.xlu1 %1337, %v1345_v29   ;;  %v2266_v29 = vsub.s32 %v854_v53, %v1401_v5 }
 0x143   :  { %v853_v32 = vsel %vm852_vm8, %v851_v15, %v846_v23  ;;  %v780_v5 = vunpack.c.l.b16 %v690_v25  ;;  %v781_v43 = vunpack.c.h.b16 %v690_v25  ;;  %v512_v26 = vpop.xlane.xlu1 %511 }
 0x144   :  { %v858_v22 = vrot.slane %v751_v42, %v2266_v29  ;;  %v506_v58 = vpop.xlane.xlu0 %505 }
 0x145   :  { %v1000_v7 = vrot.slane %v780_v5, %v2230_v8  ;;  %v1005_v10 = vrot.slane %v781_v43, %v2238_v19 }
 0x146   :  { %v2276_v57 = vsel %vm859_vm11, %v858_v22, %v853_v32 }
 0x147   :  { %v1001_v45 = vsel %vm838_vm4, %v1000_v7, %v996_v9 }
 0x148   :  { %v2282_v14 = vsel %vm845_vm5, %v1005_v10, %v1001_v45  ;;  %v509_v51 = vpop.xlane.xlu0 %508  ;;  %v530_v21 = vpop.xlane.xlu1 %529 }
 0x149   :  { %v676_v37 = vpack.c.bf16 %v509_v51, %v506_v58 }
 0x14b   :  { %v752_v13 = vunpack.c.l.b16 %v676_v37  ;;  %v753_v18 = vunpack.c.h.b16 %v676_v37 }
 0x14d   :  { %v864_v28 = vrot.slane %v752_v13, %v2209_v4  ;;  %v868_v56 = vrot.slane %v753_v18, %v2212_v60 }
 0x14e   :  { %v515_v63 = vpop.xlane.xlu0 %514 }
 0x14f   :  { %v677_v62 = vpack.c.bf16 %v515_v63, %v512_v26  ;;  %v869_v17 = vsel %vm817_vm6, %v868_v56, %v864_v28 }
 0x151   :  { %v754_v31 = vunpack.c.l.b16 %v677_v62  ;;  %v755_v59 = vunpack.c.h.b16 %v677_v62  ;;  %v536_v16 = vpop.xlane.xlu1 %535 }
 0x153   :  { %v873_v38 = vrot.slane %v754_v31, %v2215_v27  ;;  %v878_v52 = vrot.slane %v755_v59, %v2218_v30 }
 0x154   :  { %v533_v34 = vpop.xlane.xlu0 %532 }
 0x155   :  { %v680_v39 = vpack.c.bf16 %v533_v34, %v530_v21  ;;  %v874_v44 = vsel %vm824_vm0, %v873_v38, %v869_v17 }
 0x156   :  { %v879_v23 = vsel %vm831_vm9, %v878_v52, %v874_v44 }
 0x157   :  { %v760_v47 = vunpack.c.l.b16 %v680_v39  ;;  %v761_v55 = vunpack.c.h.b16 %v680_v39 }
 0x159   :  { %v903_v3 = vrot.slane %v760_v47, %v2209_v4  ;;  %v907_v20 = vrot.slane %v761_v55, %v2212_v60 }
 0x15b   :  { %v518_v1 = vpop.xlane.xlu1 %517  ;;  %v908_v54 = vsel %vm817_vm6, %v907_v20, %v903_v3 }
 0x161   :  { %v539_v6 = vpop.xlane.xlu0 %538 }
 0x162   :  { %v681_v48 = vpack.c.bf16 %v539_v6, %v536_v16 }
 0x164   :  { %v762_v53 = vunpack.c.l.b16 %v681_v48  ;;  %v763_v41 = vunpack.c.h.b16 %v681_v48 }
 0x166   :  { %v912_v0 = vrot.slane %v762_v53, %v2215_v27  ;;  %v917_v11 = vrot.slane %v763_v41, %v2218_v30 }
 0x167   :  { %v542_v46 = vpop.xlane.xlu1 %541 }
 0x168   :  { %v913_v61 = vsel %vm824_vm0, %v912_v0, %v908_v54 }
 0x169   :  { %v918_v42 = vsel %vm831_vm9, %v917_v11, %v913_v61 }
 0x16a   :  { %v521_v2 = vpop.xlane.xlu0 %520 }
 0x16b   :  { %v678_v36 = vpack.c.bf16 %v521_v2, %v518_v1 }
 0x16d   :  { %v756_v33 = vunpack.c.l.b16 %v678_v36  ;;  %v757_v50 = vunpack.c.h.b16 %v678_v36 }
 0x16f   :  { %v883_v9 = vrot.slane %v756_v33, %v2230_v8  ;;  %v888_v12 = vrot.slane %v757_v50, %v2238_v19 }
 0x170   :  { %v602_v40 = vpop.xlane.xlu1 %601 }
 0x171   :  { %v884_v22 = vsel %vm838_vm4, %v883_v9, %v879_v23 }
 0x172   :  { %v889_v43 = vsel %vm845_vm5, %v888_v12, %v884_v22 }
 0x173   :  { %v545_v49 = vpop.xlane.xlu0 %544 }
 0x174   :  { %v682_v15 = vpack.c.bf16 %v545_v49, %v542_v46 }
 0x176   :  { %v764_v25 = vunpack.c.l.b16 %v682_v15  ;;  %v765_v32 = vunpack.c.h.b16 %v682_v15 }
 0x178   :  { %v922_v7 = vrot.slane %v764_v25, %v2230_v8  ;;  %v927_v10 = vrot.slane %v765_v32, %v2238_v19 }
 0x179   :  { %v524_v5 = vpop.xlane.xlu1 %523 }
 0x17a   :  { %v923_v26 = vsel %vm838_vm4, %v922_v7, %v918_v42 }
 0x17b   :  { %v928_v18 = vsel %vm845_vm5, %v927_v10, %v923_v26 }
 0x17c   :  { %v605_v58 = vpop.xlane.xlu0 %604 }
 0x17d   :  { %v692_v45 = vpack.c.bf16 %v605_v58, %v602_v40 }
 0x17f   :  { %v784_v51 = vunpack.c.l.b16 %v692_v45  ;;  %v785_v37 = vunpack.c.h.b16 %v692_v45 }
 0x181   :  { %v1020_v63 = vrot.slane %v784_v51, %v2209_v4  ;;  %v1024_v28 = vrot.slane %v785_v37, %v2212_v60 }
 0x182   :  { %v608_v13 = vpop.xlane.xlu1 %607 }
 0x183   :  { %v1025_v62 = vsel %vm817_vm6, %v1024_v28, %v1020_v63 }
 0x185   :  { %v527_v21 = vpop.xlane.xlu0 %526 }
 0x186   :  { %v679_v56 = vpack.c.bf16 %v527_v21, %v524_v5  ;;  %v2309_v59 = vpop.xlane.xlu1 %625 }
 0x188   :  { %v758_v17 = vunpack.c.l.b16 %v679_v56  ;;  %v759_v31 = vunpack.c.h.b16 %v679_v56 }
 0x189   :  { %v611_v16 = vpop.xlane.xlu0 %610 }
 0x18a   :  { %v893_v34 = vrot.slane %v758_v17, %v2261_v24  ;;  %v898_v38 = vrot.slane %v759_v31, %v2266_v29  ;;  %v693_v52 = vpack.c.bf16 %v611_v16, %v608_v13  ;;  %v548_v55 = vpop.xlane.xlu1 %547 }
 0x18c   :  { %v894_v39 = vsel %vm852_vm8, %v893_v34, %v889_v43  ;;  %v786_v44 = vunpack.c.l.b16 %v693_v52  ;;  %v787_v47 = vunpack.c.h.b16 %v693_v52 }
 0x18d   :  { %v899_v1 = vsel %vm859_vm11, %v898_v38, %v894_v39  ;;  %v2315_v23 = vpop.xlane.xlu0 %628 }
 0x18e   :  { %v1135_v6 = vsel %vm1134_vm7, %v899_v1, %v2276_v57  ;;  %v1029_v3 = vrot.slane %v786_v44, %v2215_v27  ;;  %v1034_v20 = vrot.slane %v787_v47, %v2218_v30  ;;  %v2321_v54 = vpop.xlane.xlu1 %631 }
 0x190   :  { %v1030_v48 = vsel %vm824_vm0, %v1029_v3, %v1025_v62 }
 0x191   :  { %v1035_v53 = vsel %vm831_vm9, %v1034_v20, %v1030_v48  ;;  %v551_v41 = vpop.xlane.xlu0 %550 }
 0x192   :  { %v683_v46 = vpack.c.bf16 %v551_v41, %v548_v55  ;;  %v614_v11 = vpop.xlane.xlu1 %613 }
 0x194   :  { %v766_v2 = vunpack.c.l.b16 %v683_v46  ;;  %v767_v0 = vunpack.c.h.b16 %v683_v46 }
 0x195   :  { %v635_v36 = vpop.xlane.xlu0 %634 }
 0x196   :  { %v932_v61 = vrot.slane %v766_v2, %v2261_v24  ;;  %v937_v57 = vrot.slane %v767_v0, %v2266_v29  ;;  %v554_v50 = vpop.xlane.xlu1 %553 }
 0x198   :  { %v933_v33 = vsel %vm852_vm8, %v932_v61, %v928_v18 }
 0x199   :  { %v938_v40 = vsel %vm859_vm11, %v937_v57, %v933_v33  ;;  %v617_v42 = vpop.xlane.xlu0 %616  ;;  %v696_v57 = vpack.c.bf16 %v2315_v23, %v2309_v59 }
 0x19a   :  { %v1137_v49 = vsel %vm1136_vm2, %v938_v40, %v1135_v6  ;;  %v694_v9 = vpack.c.bf16 %v617_v42, %v614_v11  ;;  %v560_v22 = vpop.xlane.xlu1 %559 }
 0x19c   :  { %v788_v12 = vunpack.c.l.b16 %v694_v9  ;;  %v789_v15 = vunpack.c.h.b16 %v694_v9 }
 0x19d   :  { %v557_v25 = vpop.xlane.xlu0 %556 }
 0x19e   :  { %v1039_v32 = vrot.slane %v788_v12, %v2230_v8  ;;  %v1044_v5 = vrot.slane %v789_v15, %v2238_v19  ;;  %v684_v43 = vpack.c.bf16 %v557_v25, %v554_v50  ;;  %v566_v7 = vpop.xlane.xlu1 %565  ;;  %v697_v12 = vpack.c.bf16 %v635_v36, %v2321_v54 }
 0x1a0   :  { %v1040_v58 = vsel %vm838_vm4, %v1039_v32, %v1035_v53  ;;  %v768_v51 = vunpack.c.l.b16 %v684_v43  ;;  %v769_v37 = vunpack.c.h.b16 %v684_v43  ;;  %v794_v23 = vunpack.c.l.b16 %v697_v12 }
 0x1a1   :  { %v2332_v10 = vsel %vm845_vm5, %v1044_v5, %v1040_v58  ;;  %v563_v45 = vpop.xlane.xlu0 %562  ;;  %v793_v5 = vunpack.c.h.b16 %v696_v57 }
 0x1a2   :  { %v685_v26 = vpack.c.bf16 %v563_v45, %v560_v22  ;;  %v650_v18 = vpop.xlane.xlu1 %649  ;;  %v942_v28 = vrot.slane %v768_v51, %v2209_v4  ;;  %v946_v56 = vrot.slane %v769_v37, %v2212_v60  ;;  %v792_v22 = vunpack.c.l.b16 %v696_v57 }
 0x1a3   :  { %v1063_v36 = vrot.slane %v793_v5, %v2212_v60 }
 0x1a4   :  { %v770_v13 = vunpack.c.l.b16 %v685_v26  ;;  %v771_v62 = vunpack.c.h.b16 %v685_v26  ;;  %v947_v38 = vsel %vm817_vm6, %v946_v56, %v942_v28  ;;  %v795_v26 = vunpack.c.h.b16 %v697_v12 }
 0x1a5   :  { %v569_v21 = vpop.xlane.xlu0 %568  ;;  %v1068_v56 = vrot.slane %v794_v23, %v2215_v27 }
 0x1a6   :  { %v686_v63 = vpack.c.bf16 %v569_v21, %v566_v7  ;;  %v951_v17 = vrot.slane %v770_v13, %v2215_v27  ;;  %v572_v16 = vpop.xlane.xlu1 %571  ;;  %v956_v52 = vrot.slane %v771_v62, %v2218_v30 }
 0x1a8   :  { %v772_v31 = vunpack.c.l.b16 %v686_v63  ;;  %v773_v39 = vunpack.c.h.b16 %v686_v63  ;;  %v952_v44 = vsel %vm824_vm0, %v951_v17, %v947_v38 }
 0x1a9   :  { %v653_v34 = vpop.xlane.xlu0 %652  ;;  %v957_v3 = vsel %vm831_vm9, %v956_v52, %v952_v44 }
 0x1aa   :  { %v961_v47 = vrot.slane %v772_v31, %v2230_v8  ;;  %v656_v55 = vpop.xlane.xlu1 %655  ;;  %v966_v20 = vrot.slane %v773_v39, %v2238_v19  ;;  %v700_v43 = vpack.c.bf16 %v653_v34, %v650_v18  ;;  %v1073_v34 = vrot.slane %v795_v26, %v2218_v30 }
 0x1ac   :  { %v962_v48 = vsel %vm838_vm4, %v961_v47, %v957_v3  ;;  %v800_v51 = vunpack.c.l.b16 %v700_v43  ;;  %v801_v21 = vunpack.c.h.b16 %v700_v43 }
 0x1ad   :  { %v575_v1 = vpop.xlane.xlu0 %574  ;;  %v967_v61 = vsel %vm845_vm5, %v966_v20, %v962_v48 }
 0x1ae   :  { %v687_v6 = vpack.c.bf16 %v575_v1, %v572_v16  ;;  %v638_v2 = vpop.xlane.xlu1 %637  ;;  %v1098_v38 = vrot.slane %v800_v51, %v2209_v4  ;;  %v1102_v39 = vrot.slane %v801_v21, %v2212_v60 }
 0x1b0   :  { %v774_v53 = vunpack.c.l.b16 %v687_v6  ;;  %v775_v41 = vunpack.c.h.b16 %v687_v6 }
 0x1b1   :  { %v659_v46 = vpop.xlane.xlu0 %658 }
 0x1b2   :  { %v971_v0 = vrot.slane %v774_v53, %v2261_v24  ;;  %v976_v11 = vrot.slane %v775_v41, %v2266_v29  ;;  %v620_v15 = vpop.xlane.xlu1 %619  ;;  %v701_v45 = vpack.c.bf16 %v659_v46, %v656_v55 }
 0x1b4   :  { %v972_v33 = vsel %vm852_vm8, %v971_v0, %v967_v61  ;;  %v802_v62 = vunpack.c.l.b16 %v701_v45  ;;  %v803_v6 = vunpack.c.h.b16 %v701_v45  ;;  %v1103_v0 = vsel %vm817_vm6, %v1102_v39, %v1098_v38 }
 0x1b5   :  { %v977_v50 = vsel %vm859_vm11, %v976_v11, %v972_v33  ;;  %v599_v40 = vpop.xlane.xlu0 %598 }
 0x1b6   :  { %v1139_v42 = vsel %vm1138_vm13, %v977_v50, %v1137_v49  ;;  %v691_v9 = vpack.c.bf16 %v599_v40, %v2273_v35  ;;  %v1059_v49 = vrot.slane %v792_v22, %v2209_v4  ;;  %v662_v13 = vpop.xlane.xlu1 %661  ;;  %v1107_v3 = vrot.slane %v802_v62, %v2215_v27 }
 0x1b7   :  { %v1112_v57 = vrot.slane %v803_v6, %v2218_v30 }
 0x1b8   :  { %v782_v25 = vunpack.c.l.b16 %v691_v9  ;;  %v783_v32 = vunpack.c.h.b16 %v691_v9  ;;  %v1108_v27 = vsel %vm824_vm0, %v1107_v3, %v1103_v0 }
 0x1b9   :  { %v641_v58 = vpop.xlane.xlu0 %640  ;;  %v1113_v5 = vsel %vm831_vm9, %v1112_v57, %v1108_v27 }
 0x1ba   :  { %v1010_v7 = vrot.slane %v782_v25, %v2261_v24  ;;  %v1015_v59 = vrot.slane %v783_v32, %v2266_v29  ;;  %v698_v54 = vpack.c.bf16 %v641_v58, %v638_v2  ;;  %v644_v48 = vpop.xlane.xlu1 %643 }
 0x1bc   :  { %v1011_v35 = vsel %vm852_vm8, %v1010_v7, %v2282_v14  ;;  %v796_v17 = vunpack.c.l.b16 %v698_v54  ;;  %v1064_v14 = vsel %vm817_vm6, %v1063_v36, %v1059_v49  ;;  %v797_v20 = vunpack.c.h.b16 %v698_v54 }
 0x1bd   :  { %v1016_v37 = vsel %vm859_vm11, %v1015_v59, %v1011_v35  ;;  %v623_v18 = vpop.xlane.xlu0 %622  ;;  %v1069_v1 = vsel %vm824_vm0, %v1068_v56, %v1064_v14  ;;  %vm1229_vm6 = vcmask 261120  }
 0x1be   :  { %v1141_v63 = vsel %vm1140_vm15, %v1016_v37, %v1139_v42  ;;  %v695_v28 = vpack.c.bf16 %v623_v18, %v620_v15  ;;  %v1078_v53 = vrot.slane %v796_v17, %v2230_v8  ;;  %v1074_v2 = vsel %vm831_vm9, %v1073_v34, %v1069_v1  ;;  %v668_v12 = vpop.xlane.xlu1 %667 }
 0x1bf   :  { %v1083_v33 = vrot.slane %v797_v20, %v2238_v19 }
 0x1c0   :  { %v790_v31 = vunpack.c.l.b16 %v695_v28  ;;  %v791_v16 = vunpack.c.h.b16 %v695_v28 }
 0x1c1   :  { %v665_v52 = vpop.xlane.xlu0 %664 }
 0x1c2   :  { %v1049_v44 = vrot.slane %v790_v31, %v2261_v24  ;;  %v1054_v47 = vrot.slane %v791_v16, %v2266_v29  ;;  %v702_v55 = vpack.c.bf16 %v665_v52, %v662_v13  ;;  %v1225_v37 = vpop.permute.xlu1 %1224 }
 0x1c4   :  { %v1050_v4 = vsel %vm852_vm8, %v1049_v44, %v2332_v10  ;;  %v804_v41 = vunpack.c.l.b16 %v702_v55  ;;  %v805_v50 = vunpack.c.h.b16 %v702_v55  ;;  %v1079_v10 = vsel %vm838_vm4, %v1078_v53, %v1074_v2 }
 0x1c5   :  { %v1055_v60 = vsel %vm859_vm11, %v1054_v47, %v1050_v4  ;;  %v647_v46 = vpop.xlane.xlu0 %646  ;;  %v1084_v30 = vsel %vm845_vm5, %v1083_v33, %v1079_v10 }
 0x1c6   :  { %v1143_v11 = vsel %vm1142_vm1, %v1055_v60, %v1141_v63  ;;  %v699_v61 = vpack.c.bf16 %v647_v46, %v644_v48  ;;  %v1117_v40 = vrot.slane %v804_v41, %v2230_v8  ;;  %v1122_v43 = vrot.slane %v805_v50, %v2238_v19 }
 0x1c8   :  { %v798_v42 = vunpack.c.l.b16 %v699_v61  ;;  %v799_v9 = vunpack.c.h.b16 %v699_v61  ;;  %v1118_v58 = vsel %vm838_vm4, %v1117_v40, %v1113_v5 }
 0x1c9   :  { %v671_v15 = vpop.xlane.xlu0 %670  ;;  %v1123_v54 = vsel %vm845_vm5, %v1122_v43, %v1118_v58 }
 0x1ca   :  { %v1088_v22 = vrot.slane %v798_v42, %v2261_v24  ;;  %v1093_v25 = vrot.slane %v799_v9, %v2266_v29  ;;  %v703_v32 = vpack.c.bf16 %v671_v15, %v668_v12 }
 0x1cc   :  { %v1089_v8 = vsel %vm852_vm8, %v1088_v22, %v1084_v30  ;;  %v806_v7 = vunpack.c.l.b16 %v703_v32  ;;  %v807_v59 = vunpack.c.h.b16 %v703_v32 }
 0x1cd   :  { %v1094_v23 = vsel %vm859_vm11, %v1093_v25, %v1089_v8 }
 0x1ce   :  { %v1127_v45 = vrot.slane %v806_v7, %v2261_v24  ;;  %v1132_v49 = vrot.slane %v807_v59, %v2266_v29  ;;  %v1145_v35 = vsel %vm1144_vm10, %v1094_v23, %v1143_v11 }
 0x1d0   :  { %v1128_v36 = vsel %vm852_vm8, %v1127_v45, %v1123_v54 }
 0x1d1   :  { %v1133_v19 = vsel %vm859_vm11, %v1132_v49, %v1128_v36 }
 0x1d2   :  { %v1147_v26 = vsel %vm1146_vm12, %v1133_v19, %v1145_v35 }
 0x1d3   :  { %v1148_v51 = vpack.c.b16 %v1147_v26, %v1147_v26 }
 0x1d5   :  { %1328 = vmatmul.mubr.msk.bf16.vlgmr.msra.gmra.mrb[0].mxu0 %vm1173_vm14, %v1148_v51 }
 0x2a8   :  { %v1211_v13 = vpop.f32.mrb[0].mxu0 }
 0x2a9   :  { %v1227_v18 = vmul.f32 %v1225_v37, %v1211_v13  ;;  %v1329_v24 = vpop.f32.mrb[1].mxu0 }
 0x2aa   :  { %v1214_v21 = vpop.f32.mrb[2].mxu0 }
 0x2ab   :  { %v1228_v29 = vmul.f32 5.656854, %v1227_v18  ;;  %v1330_v63 = vpop.f32.mrb[3].mxu0 }
 0x2ad   :  { %1230 = vst.msk [vmem:[#allocation2] sm:$0xff] %vm1229_vm6, %v1228_v29 }
 0x2ae   :  { %1357 = shalt.err (!%p1354_p4)
}
 0x2af   :  { %s1358_s26 = scalar_lea.hbm %s2409_s3, 128 }
 0x2b0   :  { %p1359_p5 = scmp.ne.s32.totalorder %s2409_s3, %s1358_s26  ;;  %p1362_p6 = scmp.lt.u32.totalorder %s1358_s26, %s2409_s3 }
 0x2b2   :  { %p1364_p7 = pnand %p1362_p6, %p1359_p5 }
 0x2b4   :  { %1367 = shalt.err (!%p1364_p7)
}
 0x2b5   :  { %1240 = dma.vmem_to_hbm [thread:$0]  %s1238_s22, 128, %s2409_s3, [#allocation3]  }
 0x2b6   :  { %1368 = dma.done.wait [#allocation3], 128  }
 0x2b7   :  { %1369 = vsyncadd [#allocation3], 4294967168 }
 0x2b8   :  { %1244 = vsyncpa [#allocation3], 1 }

</bundles_post_ra>
